<compile_context>
chip_gen: v7x
topology: tpu7x:2x2x1
jax: 0.10.0
libtpu: 0.0.40
codegen_flags: <defaults>
</compile_context>

<pallas_src>
import functools

import jax
import jax.numpy as jnp
from jax import lax
from jax.experimental import pallas as pl
from jax.experimental.pallas import tpu as pltpu


def _round_up(x, m):
    return ((x + m - 1) // m) * m


def _physical_vmem_bytes():
    """Per-core VMEM capacity; conservative fallback if the query is unavailable."""
    try:
        return int(pltpu.get_tpu_info().vmem_capacity_bytes)
    except Exception:
        return 64 << 20  # v7x per-TC size: a safe lower bound across v5e/v6e/v7x


# ---------------------------------------------------------------------------
# Instance normalization over spatial dims + fused affine (scale, shift)
# ---------------------------------------------------------------------------
def _inorm_kernel(x_ref, scale_ref, shift_ref, o_ref, *, eps, inv_hw):
    # Single-pass statistics along the lane (spatial) axis. Sums are exact
    # under zero lane-padding, so divide by the true spatial size (inv_hw).
    x = x_ref[...].astype(jnp.float32)                      # (row_tile, hw_pad)
    s = jnp.sum(x, axis=-1, keepdims=True)                  # (row_tile, 1)  XLU
    s2 = jnp.sum(x * x, axis=-1, keepdims=True)             # (row_tile, 1)  XLU
    mean = s * inv_hw
    var = jnp.maximum(s2 * inv_hw - mean * mean, 0.0)       # clamp cancellation
    inv = lax.rsqrt(var + eps)                               # EUP
    # Fold normalization + affine into per-row (a, b):  out = x * a + b.
    a = inv * scale_ref[...]                                  # (row_tile, 1)
    b = shift_ref[...] - mean * a                             # (row_tile, 1)
    o_ref[...] = (x * a + b).astype(o_ref.dtype)


def adaptive_instance_norm_2d(x, w, wp_weight, wp_bias, bp_weight, bp_bias,
                              eps=1e-5):
    """x: (B, C, H, W) NCHW; w: (B, num_w). Returns (B, C, H, W)."""
    B, C, H, W = x.shape
    BC, HW = B * C, H * W

    # ---- Style projection: one fused tiny matmul in plain XLA. -------------
    # The '+1' on the scale half is folded into the bias at trace time.
    w_f = w.astype(jnp.float32)
    proj_w = jnp.concatenate([wp_weight, bp_weight], axis=0).astype(jnp.float32)    # (2C, num_w)
    proj_b = jnp.concatenate([wp_bias + 1.0, bp_bias], axis=0).astype(jnp.float32)  # (2C,)
    proj = jnp.dot(w_f, proj_w.T, preferred_element_type=jnp.float32) + proj_b      # (B, 2C)
    scale = proj[:, :C]
    shift = proj[:, C:]

    # ---- Layout: (BC, HW) view, lane-dense HW padding, sublane row padding. -
    itemsize = jnp.dtype(x.dtype).itemsize
    sublane = max(8, 32 // itemsize)            # 8 f32, 16 bf16, 32 int8/fp8
    bc_aligned = _round_up(BC, sublane)
    hw_pad = _round_up(HW, 128)

    # ---- Generation-aware VMEM budget & tile sizing. ------------------------
    vmem_cap = min(int(0.75 * _physical_vmem_bytes()), 96 << 20)
    # v5e/v6e (128 MiB phys -> ~96 MiB cap): ~8 MiB tiles cut per-step overhead
    # to a few %.  v7x (64 MiB phys -> ~48 MiB cap): ~4 MiB tiles keep
    # 2x(in+out) tiles + intermediates inside the budget.
    target_tile_bytes = (8 << 20) if vmem_cap >= (64 << 20) else (4 << 20)

    def _budget(rt, bufs):
        x_tile = rt * hw_pad * itemsize
        f32_tile = rt * hw_pad * 4                      # in-kernel f32 temporaries
        ss_tile = _round_up(rt, 8) * 128 * 4            # lane-padded (rt, 1) block
        return bufs * (2 * x_tile + 2 * ss_tile) + 2 * f32_tile + (4 << 20)

    row_tile = max(sublane, (target_tile_bytes // (hw_pad * 4)) // sublane * sublane)
    row_tile = min(row_tile, bc_aligned)

    buf_count = 2
    while row_tile > sublane and _budget(row_tile, 2) > vmem_cap:
        row_tile = max(sublane, (row_tile // 2) // sublane * sublane)
    if _budget(row_tile, 2) > vmem_cap:
        # Very large HW: drop to single-buffering so the kernel still fits VMEM.
        # TODO(synk): a two-pass HW-chunked grid (accumulate sum/sumsq across an
        # 'arbitrary' HW axis) would restore pipelining for extreme spatial sizes.
        buf_count = 1

    # Grid length; bias toward an even step count so v7x's two TensorCores get
    # a balanced split (costs at most one extra ~0.35 us step on 1-TC chips).
    grid_len = pl.cdiv(bc_aligned, row_tile)
    if (grid_len % 2 == 1 and grid_len <= 8 and bc_aligned >= 2 * sublane
            and buf_count == 2):
        new_rt = max(sublane, _round_up(pl.cdiv(bc_aligned, grid_len + 1), sublane))
        if pl.cdiv(bc_aligned, new_rt) % 2 == 0:
            row_tile = new_rt
            grid_len = pl.cdiv(bc_aligned, row_tile)
    bc_pad = grid_len * row_tile

    x2 = x.reshape(BC, HW)
    scale2 = scale.reshape(BC, 1)
    shift2 = shift.reshape(BC, 1)
    if bc_pad != BC or hw_pad != HW:
        x2 = jnp.pad(x2, ((0, bc_pad - BC), (0, hw_pad - HW)))  # zeros -> exact sums
    if bc_pad != BC:
        scale2 = jnp.pad(scale2, ((0, bc_pad - BC), (0, 0)))
        shift2 = jnp.pad(shift2, ((0, bc_pad - BC), (0, 0)))

    vmem_limit = int(min(max(_budget(row_tile, buf_count), 16 << 20), vmem_cap))

    def _x_spec():
        if buf_count == 1:
            return pl.BlockSpec((row_tile, hw_pad), lambda i: (i, 0),
                                pipeline_mode=pl.Buffered(1))
        return pl.BlockSpec((row_tile, hw_pad), lambda i: (i, 0))

    out2 = pl.pallas_call(
        functools.partial(_inorm_kernel, eps=eps, inv_hw=1.0 / float(HW)),
        out_shape=jax.ShapeDtypeStruct((bc_pad, hw_pad), x.dtype),
        grid_spec=pltpu.PrefetchScalarGridSpec(
            num_scalar_prefetch=0,
            grid=(grid_len,),
            in_specs=[
                _x_spec(),
                pl.BlockSpec((row_tile, 1), lambda i: (i, 0)),   # per-tile scale
                pl.BlockSpec((row_tile, 1), lambda i: (i, 0)),   # per-tile shift
            ],
            out_specs=_x_spec(),
        ),
        compiler_params=pltpu.CompilerParams(
            dimension_semantics=("parallel",),
            vmem_limit_bytes=vmem_limit,
        ),
    )(x2, scale2, shift2)

    if bc_pad != BC or hw_pad != HW:
        out2 = out2[:BC, :HW]
    return out2.reshape(B, C, H, W)


# ---------------------------------------------------------------------------
# Reference (pure JAX, two-pass statistics) for sanity checking
# ---------------------------------------------------------------------------
def _reference(x, w, wp_weight, wp_bias, bp_weight, bp_bias, eps=1e-5):
    B, C, H, W = x.shape
    scale = w @ wp_weight.T + wp_bias + 1.0
    shift = w @ bp_weight.T + bp_bias
    xr = x.reshape(B, C, -1).astype(jnp.float32)
    mean = xr.mean(axis=-1, keepdims=True)
    var = ((xr - mean) ** 2).mean(axis=-1, keepdims=True)
    y = (xr - mean) * lax.rsqrt(var + eps)
    y = y * scale.reshape(B, C, 1) + shift.reshape(B, C, 1)
    return y.reshape(B, C, H, W).astype(x.dtype)


if __name__ == "__main__":
    NUM_W = 32
    key = jax.random.PRNGKey(0)
    kx, kw, k1, k2, k3, k4 = jax.random.split(key, 6)
    bound = 1.0 / (NUM_W ** 0.5)

    def _params(c):
        return (
            jax.random.uniform(k1, (c, NUM_W), jnp.float32, -bound, bound),
            jax.random.uniform(k2, (c,), jnp.float32, -bound, bound),
            jax.random.uniform(k3, (c, NUM_W), jnp.float32, -bound, bound),
            jax.random.uniform(k4, (c,), jnp.float32, -bound, bound),
        )

    # Main case: batch=2, channels=4, spatial=16.
    B, C, H, W = 2, 4, 16, 16
    x = jax.random.normal(kx, (B, C, H, W), dtype=jnp.float32)
    w = jax.random.normal(kw, (B, NUM_W), dtype=jnp.float32)
    wp_w, wp_b, bp_w, bp_b = _params(C)
    out = jax.block_until_ready(
        adaptive_instance_norm_2d(x, w, wp_w, wp_b, bp_w, bp_b))
    ref = _reference(x, w, wp_w, wp_b, bp_w, bp_b)
    assert out.shape == (B, C, H, W)
    assert jnp.allclose(out, ref, atol=1e-4, rtol=1e-4), "mismatch vs reference"

    # Row-padding path: B*C not a multiple of 8, HW already lane-aligned.
    B2, C2, H2, W2 = 1, 3, 8, 16
    x2 = jax.random.normal(kx, (B2, C2, H2, W2), dtype=jnp.float32)
    w2 = jax.random.normal(kw, (B2, NUM_W), dtype=jnp.float32)
    wp_w2, wp_b2, bp_w2, bp_b2 = _params(C2)
    out2 = jax.block_until_ready(
        adaptive_instance_norm_2d(x2, w2, wp_w2, wp_b2, bp_w2, bp_b2))
    ref2 = _reference(x2, w2, wp_w2, wp_b2, bp_w2, bp_b2)
    assert jnp.allclose(out2, ref2, atol=1e-4, rtol=1e-4), "row-padded mismatch"

    # Lane-padding path: HW (5*7=35) not a multiple of 128, plus row padding.
    B3, C3, H3, W3 = 2, 3, 5, 7
    x3 = jax.random.normal(kx, (B3, C3, H3, W3), dtype=jnp.float32)
    w3 = jax.random.normal(kw, (B3, NUM_W), dtype=jnp.float32)
    wp_w3, wp_b3, bp_w3, bp_b3 = _params(C3)
    out3 = jax.block_until_ready(
        adaptive_instance_norm_2d(x3, w3, wp_w3, wp_b3, bp_w3, bp_b3))
    ref3 = _reference(x3, w3, wp_w3, wp_b3, bp_w3, bp_b3)
    assert jnp.allclose(out3, ref3, atol=1e-4, rtol=1e-4), "lane-padded mismatch"

    print("KERNEL_OK")
</pallas_src>

<mosaic_0001>
module attributes {stable_mosaic.version = 11 : i64} {
  func.func @_inorm_kernel(%arg0: i32, %arg1: memref<8x256xf32, #tpu.memory_space<vmem>>, %arg2: memref<8x1xf32, #tpu.memory_space<vmem>>, %arg3: memref<8x1xf32, #tpu.memory_space<vmem>>, %arg4: memref<8x256xf32, #tpu.memory_space<vmem>>) attributes {dimension_semantics = [#tpu.dimension_semantics<parallel>], iteration_bounds = array<i64: 1>, scalar_prefetch = 0 : i64, scratch_operands = 0 : i64, tpu.core_type = #tpu.core_type<tc>, window_params = [{transform_indices = @transform_0, window_bounds = array<i64: 8, 256>}, {transform_indices = @transform_1, window_bounds = array<i64: 8, 1>}, {transform_indices = @transform_2, window_bounds = array<i64: 8, 1>}, {transform_indices = @transform_3, window_bounds = array<i64: 8, 256>}]} {
    %c0 = arith.constant 0 : index
    %c0_0 = arith.constant 0 : index
    %0 = vector.load %arg1[%c0, %c0_0] : memref<8x256xf32, #tpu.memory_space<vmem>>, vector<8x256xf32>
    %cst = arith.constant dense<0.000000e+00> : vector<8xf32>
    %1 = vector.multi_reduction <add>, %0, %cst [1] : vector<8x256xf32> to vector<8xf32>
    %2 = vector.shape_cast %1 : vector<8xf32> to vector<8x1xf32>
    %3 = arith.mulf %0, %0 : vector<8x256xf32>
    %cst_1 = arith.constant dense<0.000000e+00> : vector<8xf32>
    %4 = vector.multi_reduction <add>, %3, %cst_1 [1] : vector<8x256xf32> to vector<8xf32>
    %5 = vector.shape_cast %4 : vector<8xf32> to vector<8x1xf32>
    %cst_2 = arith.constant 3.906250e-03 : f32
    %6 = vector.broadcast %cst_2 : f32 to vector<8x1xf32>
    %7 = arith.mulf %2, %6 : vector<8x1xf32>
    %cst_3 = arith.constant 3.906250e-03 : f32
    %8 = vector.broadcast %cst_3 : f32 to vector<8x1xf32>
    %9 = arith.mulf %5, %8 : vector<8x1xf32>
    %10 = arith.mulf %7, %7 : vector<8x1xf32>
    %11 = arith.subf %9, %10 : vector<8x1xf32>
    %cst_4 = arith.constant 0.000000e+00 : f32
    %12 = vector.broadcast %cst_4 : f32 to vector<8x1xf32>
    %13 = arith.maximumf %11, %12 : vector<8x1xf32>
    %cst_5 = arith.constant 9.99999974E-6 : f32
    %14 = vector.broadcast %cst_5 : f32 to vector<8x1xf32>
    %15 = arith.addf %13, %14 : vector<8x1xf32>
    %16 = math.rsqrt %15 : vector<8x1xf32>
    %c0_6 = arith.constant 0 : index
    %c0_7 = arith.constant 0 : index
    %17 = vector.load %arg2[%c0_6, %c0_7] : memref<8x1xf32, #tpu.memory_space<vmem>>, vector<8x1xf32>
    %18 = arith.mulf %16, %17 : vector<8x1xf32>
    %c0_8 = arith.constant 0 : index
    %c0_9 = arith.constant 0 : index
    %19 = vector.load %arg3[%c0_8, %c0_9] : memref<8x1xf32, #tpu.memory_space<vmem>>, vector<8x1xf32>
    %20 = arith.mulf %7, %18 : vector<8x1xf32>
    %21 = arith.subf %19, %20 : vector<8x1xf32>
    %22 = vector.broadcast %18 : vector<8x1xf32> to vector<8x256xf32>
    %23 = arith.mulf %0, %22 : vector<8x256xf32>
    %24 = vector.broadcast %21 : vector<8x1xf32> to vector<8x256xf32>
    %25 = arith.addf %23, %24 : vector<8x256xf32>
    %c0_10 = arith.constant 0 : index
    %c0_11 = arith.constant 0 : index
    %26 = vector.load %arg4[%c0_10, %c0_11] : memref<8x256xf32, #tpu.memory_space<vmem>>, vector<8x256xf32>
    tpu.vector_store %arg4[%c0_10, %c0_11], %25 {strides = array<i32>} : memref<8x256xf32, #tpu.memory_space<vmem>>, vector<8x256xf32>,
    return
  }
  func.func @transform_0(%arg0: i32) -> (i32, i32) {
    %c0_i32 = arith.constant 0 : i32
    %c0_i32_0 = arith.constant 0 : i32
    return %arg0, %c0_i32 : i32, i32
  }
  func.func @transform_1(%arg0: i32) -> (i32, i32) {
    %c0_i32 = arith.constant 0 : i32
    %c0_i32_0 = arith.constant 0 : i32
    return %arg0, %c0_i32 : i32, i32
  }
  func.func @transform_2(%arg0: i32) -> (i32, i32) {
    %c0_i32 = arith.constant 0 : i32
    %c0_i32_0 = arith.constant 0 : i32
    return %arg0, %c0_i32 : i32, i32
  }
  func.func @transform_3(%arg0: i32) -> (i32, i32) {
    %c0_i32 = arith.constant 0 : i32
    %c0_i32_0 = arith.constant 0 : i32
    return %arg0, %c0_i32 : i32, i32
  }
}

</mosaic_0001>

<bundles_post_ra>
// kernel: tpu_custom_call.1
= control target key start
LH: loop header
LB: loop body
LE: loop exit
PB: predicated region body
PF: predicated region fallthrough
CT: control target
= control target key end

     0   :  { %s143_s0 = inlined_call_operand.vmem [shape: f32[8,256], index: 0, kind: input, shape index: {}]   ;;  %s144_s1 = inlined_call_operand.vmem [shape: f32[8,1], index: 1, kind: input, shape index: {}]   ;;  %s145_s2 = inlined_call_operand.vmem [shape: f32[8,1], index: 2, kind: input, shape index: {}]   ;;  %s146_s3 = inlined_call_operand.hbm [shape: f32[8,256], index: 3, kind: output, shape index: {}]  }
   0x1   :  { %v15_v0 = vld [vmem:[%s143_s0] sm:$0xff]  ;;  %v16_v1 = vld [vmem:[%s143_s0 + $0x8] sm:$0xff] }
   0x2   :  { %8 = vsyncpa [#allocation3], 0  ;;  %v17_v2 = vadd.f32 %v16_v1, %v15_v0  ;;  %v20_v3 = vmul.f32 %v15_v0, %v15_v0  ;;  %v21_v4 = vmul.f32 %v16_v1, %v16_v1  ;;  %v97_v6 = vmov 0   ;;  %v32_v15 = vld [vmem:[%s144_s1] sm:$0xff]  ;;  %s98_s19 = smov [#allocation2]  }
   0x3   :  { %69 = vset.pattern.permute.xlu1 %v97_v6  ;;  %70 = vset.pattern.permute.xlu0 %v97_v6  ;;  %v34_v18 = vld [vmem:[%s145_s2] sm:$0xff]  ;;  %s59_s20 = sshll.u32 %s98_s19, 4  ;;  %s60_s20 = int_to_ptr.vmem [resolvable:$true] %s59_s20 }
   0x4   :  { %18 = vadd.xlane.f32.xlu0 %v17_v2  ;;  %v22_v5 = vadd.f32 %v21_v4, %v20_v3  ;;  %s73_s1 = scalar_lea.vmem %s60_s20, 256  ;;  %p78_p1 = scmp.lt.s32.totalorder %s60_s20, %s60_s20 }
   0x5   :  { %p74_p0 = scmp.ne.s32.totalorder %s60_s20, %s73_s1  ;;  %p79_p2 = scmp.lt.s32.totalorder %s73_s1, %s73_s1 }
   0x7   :  { %p80_p3 = por %p79_p2, %p78_p1 }
   0x8   :  { %23 = vadd.xlane.f32.xlu0 %v22_v5 }
   0x9   :  { %p81_p4 = pnand %p80_p3, %p74_p0 }
  0x91   :  { %v19_v7 = vpop.xlane.xlu0 %18 }
  0x92   :  { %v25_v8 = vmul.f32 0.00390625, %v19_v7 }
  0x94   :  { %v27_v10 = vmul.f32 %v25_v8, %v25_v8 }
  0x95   :  { %v24_v9 = vpop.xlane.xlu0 %23 }
  0x96   :  { %v26_v11 = vmul.f32 0.00390625, %v24_v9 }
  0x98   :  { %v28_v12 = vsub.f32 %v26_v11, %v27_v10 }
  0x9a   :  { %v29_v13 = vmax.f32 %v28_v12, 0.0 }
  0x9c   :  { %v30_v14 = vadd.f32 1e-05, %v29_v13 }
  0x9e   :  { %71 = vrsqrt.f32 %v30_v14 }
  0xa8   :  { %v72_v16 = vpop.eup %71 }
  0xa9   :  { %v33_v17 = vmul.f32 %v72_v16, %v32_v15 }
  0xab   :  { %39 = vperm.xlu1 %69, %v33_v17   ;;  %v35_v19 = vmul.f32 %v33_v17, %v25_v8 }
  0xad   :  { %v36_v20 = vsub.f32 %v34_v18, %v35_v19 }
  0xaf   :  { %46 = vperm.xlu1 %69, %v36_v20  }
 0x12a   :  { %v40_v21 = vpop.permute.xlu1 %39 }
 0x12b   :  { %v42_v22 = vmul.f32 %v40_v21, %v15_v0  ;;  %v43_v23 = vmul.f32 %v40_v21, %v16_v1 }
 0x12e   :  { %v47_v24 = vpop.permute.xlu1 %46 }
 0x12f   :  { %v49_v25 = vadd.f32 %v47_v24, %v42_v22  ;;  %v50_v26 = vadd.f32 %v47_v24, %v43_v23 }
 0x131   :  { %51 = vst [vmem:[#allocation2] sm:$0xff] %v49_v25  ;;  %52 = vst [vmem:[#allocation2 + $0x8] sm:$0xff] %v50_v26 }
 0x132   :  { %84 = shalt.err (!%p81_p4)
}
 0x133   :  { %s85_s22 = scalar_lea.hbm %s146_s3, 256 }
 0x134   :  { %p86_p5 = scmp.ne.s32.totalorder %s146_s3, %s85_s22  ;;  %p89_p6 = scmp.lt.u32.totalorder %s85_s22, %s146_s3 }
 0x136   :  { %p91_p7 = pnand %p89_p6, %p86_p5 }
 0x138   :  { %94 = shalt.err (!%p91_p7)
}
 0x139   :  { %62 = dma.vmem_to_hbm [thread:$0]  %s60_s20, 256, %s146_s3, [#allocation3]  }
 0x13a   :  { %95 = dma.done.wait [#allocation3], 256  }
 0x13b   :  { %96 = vsyncadd [#allocation3], 4294967040 }
 0x13c   :  { %66 = vsyncpa [#allocation3], 1 }

</bundles_post_ra>
